<compile_context>
chip_gen: v7x
topology: tpu7x:2x2x1
jax: 0.10.0
libtpu: 0.0.40
codegen_flags: <defaults>
</compile_context>

<pallas_src>
import functools
import math

import jax
import jax.numpy as jnp
from jax.experimental import pallas as pl
from jax.experimental.pallas import tpu as pltpu

_VMEM_LIMIT = 64 * 1024 * 1024  # stay within v7x's 64 MiB physical VMEM


# ---------------------------------------------------------------------------
# Kernels
# ---------------------------------------------------------------------------
def rmsnorm_kernel(x_ref, w_ref, o_ref, *, eps):
    x = x_ref[...].astype(jnp.float32)                     # (tm, D)
    ms = jnp.mean(x * x, axis=-1, keepdims=True)
    o_ref[...] = (x * jax.lax.rsqrt(ms + eps) * w_ref[...]).astype(o_ref.dtype)


def matmul_kernel(x_ref, w_ref, o_ref, acc_ref):
    """Tiled bf16 matmul, f32 accumulation: out = x @ w."""
    @pl.when(pl.program_id(2) == 0)
    def _():
        acc_ref[...] = jnp.zeros_like(acc_ref)

    acc_ref[...] += jnp.dot(x_ref[...], w_ref[...],
                            preferred_element_type=jnp.float32)

    @pl.when(pl.program_id(2) == pl.num_programs(2) - 1)
    def _():
        o_ref[...] = acc_ref[...].astype(o_ref.dtype)


def matmul_residual_kernel(x_ref, w_ref, res_ref, o_ref, acc_ref):
    """Tiled bf16 matmul with fused residual add: out = x @ w + res."""
    @pl.when(pl.program_id(2) == 0)
    def _():
        acc_ref[...] = jnp.zeros_like(acc_ref)

    acc_ref[...] += jnp.dot(x_ref[...], w_ref[...],
                            preferred_element_type=jnp.float32)

    @pl.when(pl.program_id(2) == pl.num_programs(2) - 1)
    def _():
        o_ref[...] = (acc_ref[...] +
                      res_ref[...].astype(jnp.float32)).astype(o_ref.dtype)


def swiglu_matmul_kernel(g_ref, u_ref, w_ref, res_ref, o_ref, acc_ref):
    """Fused SwiGLU + down projection + residual: out = (silu(g)*u) @ wd + res."""
    @pl.when(pl.program_id(2) == 0)
    def _():
        acc_ref[...] = jnp.zeros_like(acc_ref)

    g = g_ref[...].astype(jnp.float32)
    u = u_ref[...].astype(jnp.float32)
    a = (g * jax.nn.sigmoid(g) * u).astype(w_ref.dtype)    # bf16 MXU operand
    acc_ref[...] += jnp.dot(a, w_ref[...], preferred_element_type=jnp.float32)

    @pl.when(pl.program_id(2) == pl.num_programs(2) - 1)
    def _():
        o_ref[...] = (acc_ref[...] +
                      res_ref[...].astype(jnp.float32)).astype(o_ref.dtype)


def rope_kernel(x_ref, cos_ref, sin_ref, o_ref):
    """Rotate-half RoPE (pair-swap folded into Wq/Wk column permutation).

    out = x * cos + roll(x, head_dim/2) * sin_signed, sin_signed = [-sin, sin].
    """
    x = x_ref[0].astype(jnp.float32)                        # (ts, hd)
    half = x.shape[-1] // 2
    rot = pltpu.roll(x, shift=half, axis=1)                 # XLU, no MXU matmul
    o_ref[0] = (x * cos_ref[...] + rot * sin_ref[...]).astype(o_ref.dtype)


def flash_attn_kernel(q_ref, k_ref, v_ref, o_ref, m_sc, l_sc, acc_sc,
                      *, scale, tq, tk):
    """Causal flash attention for one (batch*head, q-tile) across kv-tiles."""
    qi = pl.program_id(1)
    ki = pl.program_id(2)

    @pl.when(ki == 0)
    def _():
        m_sc[...] = jnp.full_like(m_sc, -jnp.inf)
        l_sc[...] = jnp.zeros_like(l_sc)
        acc_sc[...] = jnp.zeros_like(acc_sc)

    # Skip kv blocks that are entirely in the future of this q block.
    @pl.when(ki * tk <= qi * tq + (tq - 1))
    def _():
        q = q_ref[0]                                        # (tq, hd) bf16
        k = k_ref[0]                                        # (tk, hd) bf16
        v = v_ref[0]                                        # (tk, hd) bf16
        s = jax.lax.dot_general(q, k, (((1,), (1,)), ((), ())),
                                preferred_element_type=jnp.float32) * scale
        row = qi * tq + jax.lax.broadcasted_iota(jnp.int32, (tq, tk), 0)
        col = ki * tk + jax.lax.broadcasted_iota(jnp.int32, (tq, tk), 1)
        s = jnp.where(row >= col, s, -1e30)                 # causal (mask=None)

        m_prev = m_sc[...]
        m_new = jnp.maximum(m_prev, jnp.max(s, axis=-1, keepdims=True))
        alpha = jnp.exp(m_prev - m_new)
        p = jnp.exp(s - m_new)
        l_sc[...] = alpha * l_sc[...] + jnp.sum(p, axis=-1, keepdims=True)
        acc_sc[...] = alpha * acc_sc[...] + jnp.dot(
            p.astype(v.dtype), v, preferred_element_type=jnp.float32)
        m_sc[...] = m_new

    @pl.when(ki == pl.num_programs(2) - 1)
    def _():
        inv = pl.reciprocal(l_sc[...], approx=True)         # EUP, off the VALU
        o_ref[0] = (acc_sc[...] * inv).astype(o_ref.dtype)


# ---------------------------------------------------------------------------
# Pallas wrappers
# ---------------------------------------------------------------------------
def rmsnorm(x2d, w, eps, out_dtype, tm=128):
    M, D = x2d.shape
    tm = min(tm, M)
    assert M % tm == 0
    return pl.pallas_call(
        functools.partial(rmsnorm_kernel, eps=eps),
        out_shape=jax.ShapeDtypeStruct((M, D), out_dtype),
        grid=(M // tm,),
        in_specs=[pl.BlockSpec((tm, D), lambda i: (i, 0)),
                  pl.BlockSpec((1, D), lambda i: (0, 0))],
        out_specs=pl.BlockSpec((tm, D), lambda i: (i, 0)),
        compiler_params=pltpu.CompilerParams(
            dimension_semantics=("parallel",),
            vmem_limit_bytes=_VMEM_LIMIT),
    )(x2d, w)


def tiled_matmul(x, w, residual=None, out_dtype=jnp.bfloat16,
                 tm=128, tn=128, tk=128):
    M, K = x.shape
    _, N = w.shape
    tm, tn, tk = min(tm, M), min(tn, N), min(tk, K)
    assert M % tm == 0 and N % tn == 0 and K % tk == 0
    grid = (M // tm, N // tn, K // tk)

    in_specs = [pl.BlockSpec((tm, tk), lambda i, j, k: (i, k)),
                pl.BlockSpec((tk, tn), lambda i, j, k: (k, j))]
    args = [x, w]
    if residual is None:
        kernel = matmul_kernel
    else:
        kernel = matmul_residual_kernel
        in_specs.append(pl.BlockSpec((tm, tn), lambda i, j, k: (i, j)))
        args.append(residual)

    return pl.pallas_call(
        kernel,
        out_shape=jax.ShapeDtypeStruct((M, N), out_dtype),
        grid=grid,
        in_specs=in_specs,
        out_specs=pl.BlockSpec((tm, tn), lambda i, j, k: (i, j)),
        scratch_shapes=[pltpu.VMEM((tm, tn), jnp.float32)],
        compiler_params=pltpu.CompilerParams(
            dimension_semantics=("parallel", "parallel", "arbitrary"),
            vmem_limit_bytes=_VMEM_LIMIT),
    )(*args)


def swiglu_down(gu, wd, residual, tm=128, tn=128, tk=128):
    """out = (silu(gu[:, :Hf]) * gu[:, Hf:]) @ wd + residual, fully fused."""
    M, twohf = gu.shape
    hf, N = wd.shape
    assert twohf == 2 * hf
    tm, tn, tk = min(tm, M), min(tn, N), min(tk, hf)
    assert M % tm == 0 and N % tn == 0 and hf % tk == 0
    koff = hf // tk
    grid = (M // tm, N // tn, hf // tk)
    return pl.pallas_call(
        swiglu_matmul_kernel,
        out_shape=jax.ShapeDtypeStruct((M, N), jnp.float32),
        grid=grid,
        in_specs=[
            pl.BlockSpec((tm, tk), lambda i, j, k: (i, k)),          # gate half
            pl.BlockSpec((tm, tk), lambda i, j, k: (i, k + koff)),   # up half
            pl.BlockSpec((tk, tn), lambda i, j, k: (k, j)),          # W_down
            pl.BlockSpec((tm, tn), lambda i, j, k: (i, j)),          # residual
        ],
        out_specs=pl.BlockSpec((tm, tn), lambda i, j, k: (i, j)),
        scratch_shapes=[pltpu.VMEM((tm, tn), jnp.float32)],
        compiler_params=pltpu.CompilerParams(
            dimension_semantics=("parallel", "parallel", "arbitrary"),
            vmem_limit_bytes=_VMEM_LIMIT),
    )(gu, gu, wd, residual)


def apply_rope(x, cosf, sinf, ts=128):
    """x: (B*H, S, hd) bf16; cosf/sinf: (S, hd) f32 (sign folded into sinf)."""
    BH, S, hd = x.shape
    ts = min(ts, S)
    assert S % ts == 0
    return pl.pallas_call(
        rope_kernel,
        out_shape=jax.ShapeDtypeStruct((BH, S, hd), x.dtype),
        grid=(BH, S // ts),
        in_specs=[pl.BlockSpec((1, ts, hd), lambda b, s: (b, s, 0)),
                  pl.BlockSpec((ts, hd), lambda b, s: (s, 0)),
                  pl.BlockSpec((ts, hd), lambda b, s: (s, 0))],
        out_specs=pl.BlockSpec((1, ts, hd), lambda b, s: (b, s, 0)),
        compiler_params=pltpu.CompilerParams(
            dimension_semantics=("parallel", "parallel"),
            vmem_limit_bytes=_VMEM_LIMIT),
    )(x, cosf, sinf)


def flash_attention(q, k, v, tq=128, tk=128):
    """q,k,v: (B*H, S, hd) bf16 -> (B*H, S, hd) bf16, causal."""
    BH, S, hd = q.shape
    tq, tk = min(tq, S), min(tk, S)
    assert S % tq == 0 and S % tk == 0
    kernel = functools.partial(flash_attn_kernel,
                               scale=1.0 / math.sqrt(hd), tq=tq, tk=tk)
    return pl.pallas_call(
        kernel,
        out_shape=jax.ShapeDtypeStruct((BH, S, hd), q.dtype),
        grid=(BH, S // tq, S // tk),
        in_specs=[pl.BlockSpec((1, tq, hd), lambda b, qi, ki: (b, qi, 0)),
                  pl.BlockSpec((1, tk, hd), lambda b, qi, ki: (b, ki, 0)),
                  pl.BlockSpec((1, tk, hd), lambda b, qi, ki: (b, ki, 0))],
        out_specs=pl.BlockSpec((1, tq, hd), lambda b, qi, ki: (b, qi, 0)),
        scratch_shapes=[pltpu.VMEM((tq, 1), jnp.float32),
                        pltpu.VMEM((tq, 1), jnp.float32),
                        pltpu.VMEM((tq, hd), jnp.float32)],
        compiler_params=pltpu.CompilerParams(
            dimension_semantics=("parallel", "parallel", "arbitrary"),
            vmem_limit_bytes=_VMEM_LIMIT),
    )(q, k, v)


# ---------------------------------------------------------------------------
# Model glue (parameter setup, RoPE tables, SkipSeq loop)
# ---------------------------------------------------------------------------
def precompute_freqs_cis(dim, end, theta=10000.0):
    inv = 1.0 / (theta ** (jnp.arange(0, dim, 2, dtype=jnp.float32)[: dim // 2] / dim))
    t = jnp.arange(end, dtype=jnp.float32)
    freqs = jnp.outer(t, inv)                               # (end, dim // 2)
    return jnp.cos(freqs), jnp.sin(freqs)


def ffn_hidden_dim(dmodel, multiple_of, ffn_dim_multiplier=None):
    hidden = int(2 * (4 * dmodel) / 3)
    if ffn_dim_multiplier is not None:
        hidden = int(ffn_dim_multiplier * hidden)
    return multiple_of * ((hidden + multiple_of - 1) // multiple_of)


def init_params(key, vocab_size, dmodel, num_heads, n_layers, multiple_of,
                ffn_dim_multiplier=None):
    hf = ffn_hidden_dim(dmodel, multiple_of, ffn_dim_multiplier)
    hd = dmodel // num_heads
    keys = jax.random.split(key, 1 + n_layers)
    emb = jax.random.normal(keys[0], (vocab_size, dmodel), jnp.float32) * 0.02

    # Per-head de-interleave permutation for Wq/Wk columns: [real parts, imag
    # parts].  Per-head dot products are invariant to this permutation, so it
    # lets the RoPE kernel use rotate-half (pltpu.roll) instead of a DxD matmul
    # while keeping the interleaved-pair semantics of the reference module.
    perm_head = jnp.concatenate([jnp.arange(0, hd, 2), jnp.arange(1, hd, 2)])
    perm = jnp.concatenate([h * hd + perm_head for h in range(num_heads)])

    def lin(k, fin, fout):
        w = jax.random.normal(k, (fin, fout), jnp.float32) / math.sqrt(fin)
        return w.astype(jnp.bfloat16)                       # bf16 weights (MXU)

    layers = []
    for i in range(n_layers):
        ks = jax.random.split(keys[1 + i], 7)
        wq = lin(ks[0], dmodel, dmodel)[:, perm]
        wk = lin(ks[1], dmodel, dmodel)[:, perm]
        wv = lin(ks[2], dmodel, dmodel)
        layers.append(dict(
            attn_norm=jnp.ones((1, dmodel), jnp.float32),
            ffn_norm=jnp.ones((1, dmodel), jnp.float32),
            wqkv=jnp.concatenate([wq, wk, wv], axis=1),                 # (D, 3D)
            wo=lin(ks[3], dmodel, dmodel),                              # (D, D)
            wgu=jnp.concatenate([lin(ks[4], dmodel, hf),
                                 lin(ks[5], dmodel, hf)], axis=1),      # (D, 2Hf)
            wd=lin(ks[6], hf, dmodel)))                                 # (Hf, D)
    return dict(embed=emb, layers=layers, norm=jnp.ones((1, dmodel), jnp.float32))


def transformer_block(h, lp, cosf, sinf, *, B, S, num_heads, eps):
    M, D = h.shape                                          # h: (B*S, D) f32
    hd = D // num_heads

    # ---- attention branch ----
    xn = rmsnorm(h, lp["attn_norm"], eps, jnp.bfloat16)
    qkv = tiled_matmul(xn, lp["wqkv"], out_dtype=jnp.bfloat16)          # (M, 3D)
    q, k, v = qkv[:, :D], qkv[:, D:2 * D], qkv[:, 2 * D:]

    def to_heads(t):   # (B*S, D) -> (B*H, S, hd)    [XLA layout glue]
        return (t.reshape(B, S, num_heads, hd)
                 .transpose(0, 2, 1, 3)
                 .reshape(B * num_heads, S, hd))

    qh = apply_rope(to_heads(q), cosf, sinf)
    kh = apply_rope(to_heads(k), cosf, sinf)
    oh = flash_attention(qh, kh, vh := to_heads(v))                     # bf16

    attn = (oh.reshape(B, num_heads, S, hd)
              .transpose(0, 2, 1, 3)
              .reshape(M, D))
    h1 = tiled_matmul(attn, lp["wo"], residual=h, out_dtype=jnp.float32)

    # ---- SwiGLU feed-forward branch ----
    hn = rmsnorm(h1, lp["ffn_norm"], eps, jnp.bfloat16)
    gu = tiled_matmul(hn, lp["wgu"], out_dtype=jnp.bfloat16)            # (M, 2Hf)
    return swiglu_down(gu, lp["wd"], h1)                                # f32


def skip_llama_forward(params, tokens, *, num_heads, ctx_size,
                       norm_eps=1e-5, to_skip=()):
    """SkipLLama.forward: embed -> SkipSeq(blocks) -> final RMSNorm."""
    B, S = tokens.shape
    D = params["embed"].shape[1]
    hd = D // num_heads

    # position_embeddings = (freqs_cos[:seq_l], freqs_sin[:seq_l]);
    # rotate-half layout: cos duplicated, sign (-s, +s) folded into sin.
    cos, sin = precompute_freqs_cis(hd, ctx_size)
    cosf = jnp.concatenate([cos[:S], cos[:S]], axis=-1)                 # (S, hd)
    sinf = jnp.concatenate([-sin[:S], sin[:S]], axis=-1)                # (S, hd)

    h = jnp.take(params["embed"], tokens, axis=0)                       # embedding (glue)
    h = h.reshape(B * S, D).astype(jnp.float32)

    # SkipSeq: run every block whose idx is not in to_skip.
    for i, lp in enumerate(params["layers"]):
        if i in to_skip:
            continue
        h = transformer_block(h, lp, cosf, sinf, B=B, S=S,
                              num_heads=num_heads, eps=norm_eps)

    h = rmsnorm(h, params["norm"], norm_eps, jnp.float32)
    return h.reshape(B, S, D)
    # TODO(synk): external additive attention mask / start_p KV-cache offset
    # not implemented; mask=None (causal) full-sequence forward only.
    # Dropout (dropout_prob) is an inference no-op and omitted.


# ---------------------------------------------------------------------------
if __name__ == "__main__":
    vocab_size = 512
    dmodel = 256
    num_heads = 2        # head_dim = 128 (native lane width)
    n_layers = 2
    ctx_size = 256
    multiple_of = 128
    B, S = 2, 128

    key = jax.random.PRNGKey(0)
    pkey, tkey = jax.random.split(key)
    params = init_params(pkey, vocab_size, dmodel, num_heads, n_layers, multiple_of)
    tokens = jax.random.randint(tkey, (B, S), 0, vocab_size, dtype=jnp.int32)

    out = skip_llama_forward(params, tokens, num_heads=num_heads,
                             ctx_size=ctx_size, to_skip=())
    jax.block_until_ready(out)
    assert out.shape == (B, S, dmodel) and out.dtype == jnp.float32
    assert bool(jnp.all(jnp.isfinite(out)))
    print("KERNEL_OK")
</pallas_src>

<mosaic_0001>
module attributes {stable_mosaic.version = 11 : i64} {
  func.func @rmsnorm_kernel(%arg0: i32, %arg1: memref<128x256xf32, #tpu.memory_space<vmem>>, %arg2: memref<1x256xf32, #tpu.memory_space<vmem>>, %arg3: memref<128x256xbf16, #tpu.memory_space<vmem>>) attributes {dimension_semantics = [#tpu.dimension_semantics<parallel>], iteration_bounds = array<i64: 2>, scalar_prefetch = 0 : i64, scratch_operands = 0 : i64, tpu.core_type = #tpu.core_type<tc>, window_params = [{transform_indices = @transform_0, window_bounds = array<i64: 128, 256>}, {pipeline_mode = #tpu.pipeline_mode<synchronous>, transform_indices = @transform_1, window_bounds = array<i64: 1, 256>}, {transform_indices = @transform_2, window_bounds = array<i64: 128, 256>}]} {
    %c0 = arith.constant 0 : index
    %c0_0 = arith.constant 0 : index
    %0 = vector.load %arg1[%c0, %c0_0] : memref<128x256xf32, #tpu.memory_space<vmem>>, vector<128x256xf32>
    %1 = arith.mulf %0, %0 : vector<128x256xf32>
    %cst = arith.constant dense<0.000000e+00> : vector<128xf32>
    %2 = vector.multi_reduction <add>, %1, %cst [1] : vector<128x256xf32> to vector<128xf32>
    %3 = vector.shape_cast %2 : vector<128xf32> to vector<128x1xf32>
    %cst_1 = arith.constant 2.560000e+02 : f32
    %4 = vector.broadcast %cst_1 : f32 to vector<128x1xf32>
    %5 = arith.divf %3, %4 : vector<128x1xf32>
    %cst_2 = arith.constant 9.99999974E-6 : f32
    %6 = vector.broadcast %cst_2 : f32 to vector<128x1xf32>
    %7 = arith.addf %5, %6 : vector<128x1xf32>
    %8 = math.rsqrt %7 : vector<128x1xf32>
    %9 = vector.broadcast %8 : vector<128x1xf32> to vector<128x256xf32>
    %10 = arith.mulf %0, %9 : vector<128x256xf32>
    %c0_3 = arith.constant 0 : index
    %c0_4 = arith.constant 0 : index
    %11 = vector.load %arg2[%c0_3, %c0_4] : memref<1x256xf32, #tpu.memory_space<vmem>>, vector<1x256xf32>
    %12 = vector.broadcast %11 : vector<1x256xf32> to vector<128x256xf32>
    %13 = arith.mulf %10, %12 : vector<128x256xf32>
    %14 = arith.truncf %13 : vector<128x256xf32> to vector<128x256xbf16>
    %c0_5 = arith.constant 0 : index
    %c0_6 = arith.constant 0 : index
    %15 = vector.load %arg3[%c0_5, %c0_6] : memref<128x256xbf16, #tpu.memory_space<vmem>>, vector<128x256xbf16>
    tpu.vector_store %arg3[%c0_5, %c0_6], %14 {strides = array<i32>} : memref<128x256xbf16, #tpu.memory_space<vmem>>, vector<128x256xbf16>,
    return
  }
  func.func @transform_0(%arg0: i32) -> (i32, i32) {
    %c0_i32 = arith.constant 0 : i32
    %c0_i32_0 = arith.constant 0 : i32
    return %arg0, %c0_i32 : i32, i32
  }
  func.func @transform_1(%arg0: i32) -> (i32, i32) {
    %c0_i32 = arith.constant 0 : i32
    %c0_i32_0 = arith.constant 0 : i32
    %c0_i32_1 = arith.constant 0 : i32
    return %c0_i32, %c0_i32_0 : i32, i32
  }
  func.func @transform_2(%arg0: i32) -> (i32, i32) {
    %c0_i32 = arith.constant 0 : i32
    %c0_i32_0 = arith.constant 0 : i32
    return %arg0, %c0_i32 : i32, i32
  }
}

</mosaic_0001>

<bundles_post_ra>
// kernel: tpu_custom_call.1
= control target key start
LH: loop header
LB: loop body
LE: loop exit
PB: predicated region body
PF: predicated region fallthrough
CT: control target
= control target key end

     0   :  { %7 = vsyncpa [#allocation3], 0  ;;  %s1372_s0 = inlined_call_operand.hbm [shape: f32[256,256], index: 0, kind: input, shape index: {}]   ;;  %s1373_s1 = inlined_call_operand.hbm [shape: f32[1,256], index: 1, kind: input, shape index: {}]   ;;  %s1374_s2 = inlined_call_operand.hbm [shape: bf16[256,256], index: 2, kind: output, shape index: {}]  }
   0x1   :  { %9 = vsyncpa [#allocation3 + $0x1], 0 }
   0x2   :  { %10 = vsyncpa [#allocation6], 0 }
   0x3   :  { %11 = vsyncpa [#allocation4], 0 }
   0x4   :  { %13 = vsyncpa [#allocation4 + $0x1], 0  ;;  %s924_s9 = smov 0   ;;  %s926_s10 = smov 0  }
   0x5   :  { %s928_s11 = smov 0   ;;  %s930_s12 = smov 0  }
   0x6 LB: > { %s945_s13 = sadd.s32 4294967295, %s900_s12   ;;  %s625_s14 = sadd.s32 4294967294, %s900_s12   ;;  %s900_s12 = sphi %s930_s12, %s1399_s12   ;;  %s896_s11 = sphi %s928_s11, %s1398_s11   ;;  %s892_s10 = sphi %s926_s10, %s1397_s10   ;;  %s888_s9 = sphi %s924_s9, %s1396_s9  }
   0x7   : > { %s949_s15 = sadd.s32 1, %s900_s12   ;;  %s26_s16 = sadd.s32 1, %s896_s11 }
   0x8   : > { %s23_s17 = ssub.s32 %s900_s12, %s949_s15  ;;  %p33_p0 = scmp.ne.s32.totalorder %s896_s11, %s892_s10 }
   0x9   : > { %p24_p1 = scmp.eq.s32.totalorder %s23_s17, 0  ;;  %p34_p2 = scmp.eq.s32.totalorder %s900_s12, 0 }
   0xa   : > { %p39_p3 = scmp.ne.s32.totalorder %s892_s10, %s888_s9  ;;  %p1375_p4 = scmp.eq.s32.totalorder %s945_s13, 0 }
   0xb   : > { %s961_s18 = scalar_select %p24_p1, %s896_s11, %s26_s16  }
   0xc   : > { %p963_p5 = por %p34_p2, %p33_p0  ;;  %p969_p6 = por %p1375_p4, %p39_p3 }
   0xd   : > { %p84_p7 = scmp.eq.s32.totalorder %s945_s13, 1  ;;  %p90_p8 = scmp.eq.s32.totalorder %s625_s14, 1 }
   0xe   : > { %s1381_s20 = scalar_select %p969_p6, 1, 0 }
   0xf   : > { %p626_p9 = scmp.ge.s32.totalorder %s900_s12, 1  ;;  %p97_p10 = scmp.lt.s32.totalorder %s900_s12, 3 }
  0x10   : > { %p976_p11 = por %p84_p7, %p33_p0  ;;  %p980_p12 = por %p90_p8, %p39_p3 }
  0x11   : > { %p984_p13 = pnand %p626_p9, %p97_p10  ;;  %s902_s24 = smov [#allocation5]  }
  0x12   : > { %s1382_s21 = scalar_select %p976_p11, 1, 0 }
  0x13   : > { %s1383_s22 = scalar_select %p980_p12, 1, 0 }
  0x14   : > { %s1384_s23 = scalar_select %p984_p13, 1, 0 }
  0x15   : > { %p687_p2 = pneg %p984_p13  ;;  %s110_s25 = sshll.u32 %s902_s24, 4  ;;  %s111_s25 = int_to_ptr.vmem [resolvable:$true] %s110_s25 }
  0x16   : > { %p700_p4 = scmp.lt.s32.totalorder %s900_s12, 2  ;;  %p1385_p0 = scmp.eq.s32.totalorder %s945_s13, 0 }
  0x17   : > { %s121_s27 = sand.u32 1, %s896_s11   ;;  %s772_s4 = scalar_lea.hbm %s1373_s1, 32 }
  0x18   : > { %p994_p7 = pnand %p687_p2, %p1385_p0  ;;  %p1001_p3 = pnand %p700_p4, %p963_p5 }
  0x19   : > { %s629_s29 = sshll.u32 %s121_s27, 8  ;;  %p773_p8 = scmp.ne.s32.totalorder %s1373_s1, %s772_s4 }
  0x1a   : > { %s1387_s28 = scalar_select %p1001_p3, 1, 0 }
  0x1b   : > { %p774_p9 = pneg %p994_p7  ;;  %p779_p4 = scmp.lt.u32.totalorder %s772_s4, %s1373_s1 }
  0x1d   : > { %p775_p10 = pnand %p774_p9, %p773_p8 }
  0x1f   : > { %p776_p2 = pneg %p775_p10 }
  0x21   : > { %p781_p5 = pnand %p779_p4, %p776_p2 }
  0x23   : > { %784 = shalt.err (!%p781_p5)
}
  0x24   : > { %s785_s14 = scalar_lea.vmem %s111_s25, 32  ;;  %p793_p11 = scmp.lt.s32.totalorder %s111_s25, %s111_s25 }
  0x25   : > { %p786_p0 = scmp.ne.s32.totalorder %s111_s25, %s785_s14  ;;  %p794_p6 = scmp.lt.s32.totalorder %s785_s14, %s785_s14 }
  0x27   : > { %p788_p1 = pnand %p786_p0, %p774_p9  ;;  %p795_p13 = por %p794_p6, %p793_p11 }
  0x29   : > { %p789_p12 = pneg %p788_p1 }
  0x2b   : > { %p796_p3 = pnand %p795_p13, %p789_p12 }
  0x2d   : > { %799 = shalt.err (!%p796_p3)
}
  0x2e   : > { %690 = dma.hbm_to_vmem [thread:$0]  (!%p994_p7), %s1373_s1, 32, %s111_s25, [#allocation6]  }
  0x2f   : > { %s660_s19 = sshll.u32 %s900_s12, 12  ;;  %s125_s24 = scalar_lea.vmem [#allocation2], %s629_s29 }
  0x30   : > { %s133_s30 = sshll.u32 %s125_s24, 4  ;;  %s1025_s5 = scalar_lea.hbm %s1372_s0, %s660_s19  ;;  %s1027_s30 = int_to_ptr.vmem [resolvable:$true] %s133_s30 }
  0x31   : > { %s1029_s26 = scalar_lea.sflag [#allocation3], %s121_s27  ;;  %s800_s6 = scalar_lea.hbm %s1025_s5, 4096 }
  0x32   : > { %p801_p6 = scmp.ne.s32.totalorder %s1025_s5, %s800_s6  ;;  %p1388_p11 = scmp.ne.s32.totalorder %s1387_s28, 0 }
  0x33   : > { %s805_s7 = scalar_lea.hbm %s1372_s0, 8192  ;;  %p806_p7 = scmp.lt.u32.totalorder %s1025_s5, %s1372_s0 }
  0x34   : > { %p802_p12 = pneg %p1388_p11  ;;  %p807_p3 = scmp.lt.u32.totalorder %s805_s7, %s800_s6 }
  0x35   : > { %p809_p9 = scmp.lt.u32.totalorder %s800_s6, %s1025_s5 }
  0x36   : > { %p803_p13 = pnand %p802_p12, %p801_p6  ;;  %p808_p8 = por %p807_p3, %p806_p7 }
  0x38   : > { %p804_p1 = pneg %p803_p13  ;;  %p810_p10 = por %p809_p9, %p808_p8 }
  0x3a   : > { %p811_p2 = pnand %p810_p10, %p804_p1 }
  0x3c   : > { %814 = shalt.err (!%p811_p2)
}
  0x3d   : > { %s815_s27 = scalar_lea.vmem %s1027_s30, 4096  ;;  %s903_s16 = smov [#allocation2]  }
  0x3e   : > { %p816_p4 = scmp.ne.s32.totalorder %s1027_s30, %s815_s27  ;;  %s820_s17 = sshll.u32 %s903_s16, 4  ;;  %s821_s17 = int_to_ptr.vmem [resolvable:$false] %s820_s17 }
  0x3f   : > { %s822_s19 = scalar_lea.vmem %s821_s17, 8192  ;;  %p823_p6 = scmp.lt.s32.totalorder %s1027_s30, %s821_s17 }
  0x40   : > { %p818_p5 = pnand %p816_p4, %p802_p12  ;;  %p824_p13 = scmp.lt.s32.totalorder %s822_s19, %s815_s27 }
  0x42   : > { %p819_p0 = pneg %p818_p5  ;;  %p825_p7 = por %p824_p13, %p823_p6 }
  0x44   : > { %p826_p3 = pnand %p825_p7, %p819_p0 }
  0x46   : > { %829 = shalt.err (!%p826_p3)
}
  0x47   : > { %s904_s24 = smov 256   ;;  %s905_s3 = smov 16  }
  0x48   : > { %694 = dma.hbm_to_vmem [thread:$0]  (!%p1388_p11), %s1025_s5, 4096, %s1027_s30, %s1029_s26, %s904_s24, %s904_s24, %s905_s3  }
  0x49   : > { %p1389_p12 = scmp.ne.s32.totalorder %s1384_s23, 0 }
  0x4a   : > { %s1060_s4 = sand.u32 (!%p1389_p12), 1, %s892_s10   ;;  %p1390_p1 = scmp.ne.s32.totalorder (!%p1389_p12), %s1381_s20, 0 }
  0x4b   : > { %145 = sbr.rel (%p1389_p12) target bundleno = 299 (0x12b), region = 28  ;;  %s634_s6 = sshll.u32 (!%p1389_p12), %s1060_s4, 8 }
  0x4c   : > { %s148_s25 = scalar_lea.sflag (!%p1389_p12), [#allocation3], %s1060_s4  ;;  %s1064_s29 = scalar_lea.vmem (!%p1389_p12), [#allocation2], %s634_s6 }
  0x52   : > { %875 = dma.done.wait (%p1390_p1), %s148_s25, 4096  }
  0x53   : > { %877 = vsyncadd (%p1390_p1), %s148_s25, 4294963200  ;;  %p1391_p11 = scmp.eq.s32.totalorder %s945_s13, 0 }
  0x55   : > { %879 = dma.done.wait (%p1391_p11), [#allocation6], 32   ;;  %p1392_p8 = pmov %p1391_p11 }
  0x56   : > { %v1075_v0 = vld [vmem:[%s1064_s29 + $0x20] sm:$0xff]  ;;  %v1078_v1 = vld [vmem:[%s1064_s29 + $0x28] sm:$0xff]  ;;  %v1093_v7 = vld [vmem:[%s1064_s29 + $0x30] sm:$0xff]  ;;  %s636_s20 = sshll.u32 %s1060_s4, 7  ;;  %s678_s28 = sshll.u32 %s945_s13, 11 }
  0x57   : > { %881 = vsyncadd (%p1392_p8), [#allocation6], 4294967264  ;;  %v1081_v2 = vld [vmem:[%s1064_s29] sm:$0xff]  ;;  %v214_v3 = vmul.f32 %v1075_v0, %v1075_v0  ;;  %v215_v4 = vmul.f32 %v1078_v1, %v1078_v1  ;;  %v1088_v5 = vld [vmem:[%s1064_s29 + $0x8] sm:$0xff]  ;;  %v216_v10 = vmul.f32 %v1093_v7, %v1093_v7  ;;  %s1251_s23 = scalar_lea.vmem [#allocation7], %s636_s20  ;;  %s1324_s7 = scalar_lea.hbm %s1374_s2, %s678_s28 }
  0x58   : > { %v210_v6 = vmul.f32 %v1081_v2, %v1081_v2  ;;  %v1096_v8 = vld [vmem:[%s1064_s29 + $0x38] sm:$0xff]  ;;  %v211_v9 = vmul.f32 %v1088_v5, %v1088_v5  ;;  %v1105_v12 = vld [vmem:[%s1064_s29 + $0x10] sm:$0xff]  ;;  %v1121_v19 = vld [vmem:[%s1064_s29 + $0x40] sm:$0xff]  ;;  %s542_s30 = sshll.u32 %s1251_s23, 4  ;;  %s528_s13 = scalar_lea.sflag [#allocation4], %s1060_s4  ;;  %s1326_s30 = int_to_ptr.vmem [resolvable:$true] %s542_s30 }
  0x59   : > { %v217_v11 = vmul.f32 %v1096_v8, %v1096_v8  ;;  %v1108_v13 = vld [vmem:[%s1064_s29 + $0x18] sm:$0xff]  ;;  %v1111_v14 = vld [vmem:[%s1064_s29 + $0x50] sm:$0xff]  ;;  %v248_v15 = vadd.f32 %v215_v4, %v214_v3  ;;  %v212_v16 = vmul.f32 %v1105_v12, %v1105_v12  ;;  %v1124_v20 = vld [vmem:[%s1064_s29 + $0x48] sm:$0xff]  ;;  %v218_v26 = vmul.f32 %v1121_v19, %v1121_v19  ;;  %s830_s8 = scalar_lea.vmem %s1326_s30, 2048  ;;  %p1393_p10 = scmp.ne.s32.totalorder %s1382_s21, 0 }
  0x5a   : > { %v213_v17 = vmul.f32 %v1108_v13, %v1108_v13  ;;  %v1118_v18 = vld [vmem:[%s1064_s29 + $0x58] sm:$0xff]  ;;  %v242_v21 = vadd.f32 %v211_v9, %v210_v6  ;;  %v220_v23 = vmul.f32 %v1111_v14, %v1111_v14  ;;  %v219_v27 = vmul.f32 %v1124_v20, %v1124_v20  ;;  %v1135_v28 = vld [vmem:[%s1064_s29 + $0x70] sm:$0xff]  ;;  %v1141_v30 = vld [vmem:[%s1064_s29 + $0x60] sm:$0xff]  ;;  %p831_p9 = scmp.ne.s32.totalorder %s1326_s30, %s830_s8  ;;  %s906_s14 = smov [#allocation7]  }
  0x5b   : > { %249 = vadd.xlane.f32.xlu1 %v248_v15  ;;  %v251_v22 = vadd.f32 %v217_v11, %v216_v10  ;;  %v221_v24 = vmul.f32 %v1118_v18, %v1118_v18  ;;  %v1138_v29 = vld [vmem:[%s1064_s29 + $0x78] sm:$0xff]  ;;  %v1144_v31 = vld [vmem:[%s1064_s29 + $0x68] sm:$0xff]  ;;  %v224_v33 = vmul.f32 %v1135_v28, %v1135_v28  ;;  %v222_v36 = vmul.f32 %v1141_v30, %v1141_v30  ;;  %v1155_v38 = vld [vmem:[%s1064_s29 + $0x90] sm:$0xff]  ;;  %s834_s27 = sshll.u32 %s906_s14, 4  ;;  %s835_s27 = int_to_ptr.vmem [resolvable:$false] %s834_s27 }
  0x5c   : > { %243 = vadd.xlane.f32.xlu0 %v242_v21  ;;  %v245_v25 = vadd.f32 %v213_v17, %v212_v16  ;;  %v225_v34 = vmul.f32 %v1138_v29, %v1138_v29  ;;  %v254_v35 = vadd.f32 %v219_v27, %v218_v26  ;;  %v223_v37 = vmul.f32 %v1144_v31, %v1144_v31  ;;  %v1158_v39 = vld [vmem:[%s1064_s29 + $0x98] sm:$0xff]  ;;  %v1161_v40 = vld [vmem:[%s1064_s29 + $0x80] sm:$0xff]  ;;  %v1164_v41 = vld [vmem:[%s1064_s29 + $0x88] sm:$0xff]  ;;  %p832_p2 = pnand %p831_p9, %p1393_p10  ;;  %s836_s16 = scalar_lea.vmem %s835_s27, 4096 }
  0x5d   : > { %v257_v32 = vadd.f32 %v221_v24, %v220_v23  ;;  %v228_v43 = vmul.f32 %v1155_v38, %v1155_v38  ;;  %v229_v44 = vmul.f32 %v1158_v39, %v1158_v39  ;;  %v226_v46 = vmul.f32 %v1161_v40, %v1161_v40  ;;  %v1175_v48 = vld [vmem:[%s1064_s29 + $0xb0] sm:$0xff]  ;;  %v1178_v49 = vld [vmem:[%s1064_s29 + $0xb8] sm:$0xff]  ;;  %v1181_v50 = vld [vmem:[%s1064_s29 + $0xa0] sm:$0xff]  ;;  %p837_p5 = scmp.lt.s32.totalorder %s1326_s30, %s835_s27  ;;  %p838_p0 = scmp.lt.s32.totalorder %s836_s16, %s830_s8 }
  0x5e   : > { %v263_v42 = vadd.f32 %v225_v34, %v224_v33  ;;  %v260_v45 = vadd.f32 %v223_v37, %v222_v36  ;;  %v227_v47 = vmul.f32 %v1164_v41, %v1164_v41  ;;  %v1184_v51 = vld [vmem:[%s1064_s29 + $0xa8] sm:$0xff]  ;;  %v232_v53 = vmul.f32 %v1175_v48, %v1175_v48  ;;  %v1195_v58 = vld [vmem:[%s1064_s29 + $0xd0] sm:$0xff]  ;;  %v1198_v59 = vld [vmem:[%s1064_s29 + $0xd8] sm:$0xff]  ;;  %p833_p4 = pneg %p832_p2 }
  0x5f   : > { %252 = vadd.xlane.f32.xlu1 %v251_v22  ;;  %v269_v52 = vadd.f32 %v229_v44, %v228_v43  ;;  %v233_v54 = vmul.f32 %v1178_v49, %v1178_v49  ;;  %v230_v56 = vmul.f32 %v1181_v50, %v1181_v50  ;;  %v231_v57 = vmul.f32 %v1184_v51, %v1184_v51  ;;  %v1201_v60 = vld [vmem:[%s1064_s29 + $0xc0] sm:$0xff]  ;;  %v1204_v61 = vld [vmem:[%s1064_s29 + $0xc8] sm:$0xff]  ;;  %v1215_v10 = vld [vmem:[%s1064_s29 + $0xf0] sm:$0xff]  ;;  %p839_p6 = por %p838_p0, %p837_p5 }
  0x60   : > { %246 = vadd.xlane.f32.xlu0 %v245_v25  ;;  %v266_v55 = vadd.f32 %v227_v47, %v226_v46  ;;  %v236_v63 = vmul.f32 %v1195_v58, %v1195_v58  ;;  %v237_v3 = vmul.f32 %v1198_v59, %v1198_v59  ;;  %v234_v6 = vmul.f32 %v1201_v60, %v1201_v60  ;;  %v1218_v11 = vld [vmem:[%s1064_s29 + $0xf8] sm:$0xff]  ;;  %v1221_v15 = vld [vmem:[%s1064_s29 + $0xe0] sm:$0xff]  ;;  %v1224_v16 = vld [vmem:[%s1064_s29 + $0xe8] sm:$0xff] }
  0x61   : > { %v275_v62 = vadd.f32 %v233_v54, %v232_v53  ;;  %v272_v4 = vadd.f32 %v231_v57, %v230_v56  ;;  %v235_v9 = vmul.f32 %v1204_v61, %v1204_v61  ;;  %v240_v21 = vmul.f32 %v1215_v10, %v1215_v10  ;;  %p840_p13 = pnand %p839_p6, %p833_p4 }
  0x62   : > { %v281_v17 = vadd.f32 %v237_v3, %v236_v63  ;;  %v241_v22 = vmul.f32 %v1218_v11, %v1218_v11  ;;  %v238_v24 = vmul.f32 %v1221_v15, %v1221_v15  ;;  %v239_v25 = vmul.f32 %v1224_v16, %v1224_v16  ;;  %v371_v3 = vld [vmem:[#allocation5] sm:$0x3] }
  0x63   : > { %258 = vadd.xlane.f32.xlu1 %v257_v32  ;;  %v278_v23 = vadd.f32 %v235_v9, %v234_v6 }
  0x64   : > { %255 = vadd.xlane.f32.xlu0 %v254_v35  ;;  %v287_v26 = vadd.f32 %v241_v22, %v240_v21  ;;  %v284_v27 = vadd.f32 %v239_v25, %v238_v24  ;;  %v373_v35 = vlaneseq }
  0x66   : > { %v374_v46 = vshrl.u32 %v373_v35, 7 }
  0x67   : > { %264 = vadd.xlane.f32.xlu1 %v263_v42 }
  0x68   : > { %261 = vadd.xlane.f32.xlu0 %v260_v45  ;;  %v375_v57 = vsub.s32 0, %v374_v46 }
  0x6a   : > { %v1234_v22 = vrot.slane %v371_v3, %v375_v57 }
  0x6b   : > { %270 = vadd.xlane.f32.xlu1 %v269_v52 }
  0x6c   : > { %267 = vadd.xlane.f32.xlu0 %v266_v55 }
  0x6f   : > { %276 = vadd.xlane.f32.xlu1 %v275_v62  ;;  %v379_v62 = vsub.s32 1, %v374_v46 }
  0x70   : > { %273 = vadd.xlane.f32.xlu0 %v272_v4 }
  0x73   : > { %282 = vadd.xlane.f32.xlu1 %v281_v17 }
  0x74   : > { %279 = vadd.xlane.f32.xlu0 %v278_v23  ;;  %v1236_v23 = vrot.slane %v371_v3, %v379_v62 }
  0x77   : > { %288 = vadd.xlane.f32.xlu1 %v287_v26 }
  0x78   : > { %285 = vadd.xlane.f32.xlu0 %v284_v27 }
  0xe8   : > { %v250_v32 = vpop.xlane.xlu1 %249 }
  0xe9   : > { %v293_v33 = vmul.f32 0.00390625, %v250_v32  ;;  %v244_v34 = vpop.xlane.xlu0 %243 }
  0xea   : > { %v291_v36 = vmul.f32 0.00390625, %v244_v34 }
  0xeb   : > { %v309_v37 = vadd.f32 1e-05, %v293_v33 }
  0xec   : > { %v307_v42 = vadd.f32 1e-05, %v291_v36  ;;  %v253_v43 = vpop.xlane.xlu1 %252 }
  0xed   : > { %740 = vrsqrt.f32 %v309_v37  ;;  %v294_v44 = vmul.f32 0.00390625, %v253_v43  ;;  %v247_v45 = vpop.xlane.xlu0 %246 }
  0xee   : > { %742 = vrsqrt.f32 %v307_v42  ;;  %v292_v47 = vmul.f32 0.00390625, %v247_v45 }
  0xef   : > { %v310_v52 = vadd.f32 1e-05, %v294_v44 }
  0xf0   : > { %v308_v53 = vadd.f32 1e-05, %v292_v47  ;;  %v259_v54 = vpop.xlane.xlu1 %258 }
  0xf1   : > { %744 = vrsqrt.f32 %v310_v52  ;;  %v296_v55 = vmul.f32 0.00390625, %v259_v54  ;;  %v256_v56 = vpop.xlane.xlu0 %255 }
  0xf2   : > { %746 = vrsqrt.f32 %v308_v53  ;;  %v295_v63 = vmul.f32 0.00390625, %v256_v56 }
  0xf3   : > { %v312_v4 = vadd.f32 1e-05, %v296_v55 }
  0xf4   : > { %v311_v6 = vadd.f32 1e-05, %v295_v63  ;;  %v265_v9 = vpop.xlane.xlu1 %264 }
  0xf5   : > { %748 = vrsqrt.f32 %v312_v4  ;;  %v298_v17 = vmul.f32 0.00390625, %v265_v9  ;;  %v262_v21 = vpop.xlane.xlu0 %261 }
  0xf6   : > { %750 = vrsqrt.f32 %v311_v6  ;;  %v297_v24 = vmul.f32 0.00390625, %v262_v21 }
  0xf7   : > { %v741_v25 = vpop.eup %740  ;;  %v314_v26 = vadd.f32 1e-05, %v298_v17 }
  0xf8   : > { %v743_v27 = vpop.eup %742  ;;  %v343_v32 = vmul.f32 %v741_v25, %v1075_v0  ;;  %v344_v33 = vmul.f32 %v741_v25, %v1078_v1  ;;  %v313_v34 = vadd.f32 1e-05, %v297_v24  ;;  %v271_v35 = vpop.xlane.xlu1 %270 }
  0xf9   : > { %v339_v36 = vmul.f32 %v743_v27, %v1081_v2  ;;  %v340_v37 = vmul.f32 %v743_v27, %v1088_v5  ;;  %752 = vrsqrt.f32 %v314_v26  ;;  %v300_v42 = vmul.f32 0.00390625, %v271_v35  ;;  %v268_v43 = vpop.xlane.xlu0 %267 }
  0xfa   : > { %v387_v44 = vmul.f32 %v1234_v22, %v343_v32  ;;  %v388_v45 = vmul.f32 %v1236_v23, %v344_v33  ;;  %754 = vrsqrt.f32 %v313_v34  ;;  %v299_v46 = vmul.f32 0.00390625, %v268_v43 }
  0xfb   : > { %v745_v47 = vpop.eup %744  ;;  %v383_v0 = vmul.f32 %v1234_v22, %v339_v36  ;;  %v384_v1 = vmul.f32 %v1236_v23, %v340_v37  ;;  %v316_v52 = vadd.f32 1e-05, %v300_v42 }
  0xfc   : > { %v747_v53 = vpop.eup %746  ;;  %v663_v54 = vpack.c.bf16 %v388_v45, %v387_v44  ;;  %v345_v2 = vmul.f32 %v745_v47, %v1093_v7  ;;  %v346_v5 = vmul.f32 %v745_v47, %v1096_v8  ;;  %v315_v55 = vadd.f32 1e-05, %v299_v46  ;;  %v277_v56 = vpop.xlane.xlu1 %276 }
  0xfd   : > { %v661_v57 = vpack.c.bf16 %v384_v1, %v383_v0  ;;  %v341_v62 = vmul.f32 %v747_v53, %v1105_v12  ;;  %v342_v63 = vmul.f32 %v747_v53, %v1108_v13  ;;  %756 = vrsqrt.f32 %v316_v52  ;;  %v274_v3 = vpop.xlane.xlu0 %273 }
  0xfe   : > { %513 = vst [vmem:[%s1251_s23 + $0x10] sm:$0xff] %v663_v54  ;;  %v389_v4 = vmul.f32 %v1234_v22, %v345_v2  ;;  %v390_v7 = vmul.f32 %v1236_v23, %v346_v5  ;;  %758 = vrsqrt.f32 %v315_v55  ;;  %v302_v8 = vmul.f32 0.00390625, %v277_v56 }
  0xff   : > { %v749_v6 = vpop.eup %748  ;;  %511 = vst [vmem:[%s1251_s23] sm:$0xff] %v661_v57  ;;  %v385_v12 = vmul.f32 %v1234_v22, %v341_v62  ;;  %v386_v13 = vmul.f32 %v1236_v23, %v342_v63  ;;  %v301_v9 = vmul.f32 0.00390625, %v274_v3 }
 0x100   : > { %v751_v17 = vpop.eup %750  ;;  %v664_v21 = vpack.c.bf16 %v390_v7, %v389_v4  ;;  %v349_v24 = vmul.f32 %v749_v6, %v1111_v14  ;;  %v350_v25 = vmul.f32 %v749_v6, %v1118_v18  ;;  %v318_v26 = vadd.f32 1e-05, %v302_v8  ;;  %v283_v27 = vpop.xlane.xlu1 %282 }
 0x101   : > { %v662_v32 = vpack.c.bf16 %v386_v13, %v385_v12  ;;  %v347_v33 = vmul.f32 %v751_v17, %v1121_v19  ;;  %v348_v34 = vmul.f32 %v751_v17, %v1124_v20  ;;  %v317_v35 = vadd.f32 1e-05, %v301_v9  ;;  %v280_v36 = vpop.xlane.xlu0 %279 }
 0x102   : > { %514 = vst [vmem:[%s1251_s23 + $0x18] sm:$0xff] %v664_v21  ;;  %v393_v37 = vmul.f32 %v1234_v22, %v349_v24  ;;  %v394_v42 = vmul.f32 %v1236_v23, %v350_v25  ;;  %760 = vrsqrt.f32 %v318_v26  ;;  %v304_v43 = vmul.f32 0.00390625, %v283_v27 }
 0x103   : > { %v753_v44 = vpop.eup %752  ;;  %512 = vst [vmem:[%s1251_s23 + $0x8] sm:$0xff] %v662_v32  ;;  %v391_v14 = vmul.f32 %v1234_v22, %v347_v33  ;;  %v392_v18 = vmul.f32 %v1236_v23, %v348_v34  ;;  %762 = vrsqrt.f32 %v317_v35  ;;  %v303_v19 = vmul.f32 0.00390625, %v280_v36 }
 0x104   : > { %v755_v45 = vpop.eup %754  ;;  %v666_v20 = vpack.c.bf16 %v394_v42, %v393_v37  ;;  %v353_v46 = vmul.f32 %v753_v44, %v1135_v28  ;;  %v354_v47 = vmul.f32 %v753_v44, %v1138_v29  ;;  %v320_v0 = vadd.f32 1e-05, %v304_v43  ;;  %v289_v1 = vpop.xlane.xlu1 %288 }
 0x105   : > { %v665_v52 = vpack.c.bf16 %v392_v18, %v391_v14  ;;  %v351_v53 = vmul.f32 %v755_v45, %v1141_v30  ;;  %v352_v54 = vmul.f32 %v755_v45, %v1144_v31  ;;  %v319_v2 = vadd.f32 1e-05, %v303_v19  ;;  %v286_v5 = vpop.xlane.xlu0 %285 }
 0x106   : > { %516 = vst [vmem:[%s1251_s23 + $0x28] sm:$0xff] %v666_v20  ;;  %v397_v55 = vmul.f32 %v1234_v22, %v353_v46  ;;  %v398_v56 = vmul.f32 %v1236_v23, %v354_v47  ;;  %764 = vrsqrt.f32 %v320_v0  ;;  %v306_v57 = vmul.f32 0.00390625, %v289_v1 }
 0x107   : > { %v757_v28 = vpop.eup %756  ;;  %515 = vst [vmem:[%s1251_s23 + $0x20] sm:$0xff] %v665_v52  ;;  %v395_v29 = vmul.f32 %v1234_v22, %v351_v53  ;;  %v396_v62 = vmul.f32 %v1236_v23, %v352_v54  ;;  %766 = vrsqrt.f32 %v319_v2  ;;  %v305_v30 = vmul.f32 0.00390625, %v286_v5 }
 0x108   : > { %v759_v31 = vpop.eup %758  ;;  %v668_v63 = vpack.c.bf16 %v398_v56, %v397_v55  ;;  %v357_v3 = vmul.f32 %v757_v28, %v1155_v38  ;;  %v358_v4 = vmul.f32 %v757_v28, %v1158_v39  ;;  %v322_v7 = vadd.f32 1e-05, %v306_v57 }
 0x109   : > { %v667_v8 = vpack.c.bf16 %v396_v62, %v395_v29  ;;  %v355_v6 = vmul.f32 %v759_v31, %v1161_v40  ;;  %v356_v12 = vmul.f32 %v759_v31, %v1164_v41  ;;  %v321_v13 = vadd.f32 1e-05, %v305_v30 }
 0x10a   : > { %518 = vst [vmem:[%s1251_s23 + $0x38] sm:$0xff] %v668_v63  ;;  %v401_v9 = vmul.f32 %v1234_v22, %v357_v3  ;;  %v402_v17 = vmul.f32 %v1236_v23, %v358_v4  ;;  %768 = vrsqrt.f32 %v322_v7 }
 0x10b   : > { %517 = vst [vmem:[%s1251_s23 + $0x30] sm:$0xff] %v667_v8  ;;  %v399_v38 = vmul.f32 %v1234_v22, %v355_v6  ;;  %v400_v39 = vmul.f32 %v1236_v23, %v356_v12  ;;  %770 = vrsqrt.f32 %v321_v13 }
 0x10c   : > { %v761_v21 = vpop.eup %760  ;;  %v670_v24 = vpack.c.bf16 %v402_v17, %v401_v9 }
 0x10d   : > { %v763_v40 = vpop.eup %762  ;;  %v669_v25 = vpack.c.bf16 %v400_v39, %v399_v38  ;;  %v361_v41 = vmul.f32 %v761_v21, %v1175_v48  ;;  %v362_v26 = vmul.f32 %v761_v21, %v1178_v49 }
 0x10e   : > { %520 = vst [vmem:[%s1251_s23 + $0x48] sm:$0xff] %v670_v24  ;;  %v359_v27 = vmul.f32 %v763_v40, %v1181_v50  ;;  %v360_v32 = vmul.f32 %v763_v40, %v1184_v51 }
 0x10f   : > { %519 = vst [vmem:[%s1251_s23 + $0x40] sm:$0xff] %v669_v25  ;;  %v405_v33 = vmul.f32 %v1234_v22, %v361_v41  ;;  %v406_v34 = vmul.f32 %v1236_v23, %v362_v26 }
 0x110   : > { %v765_v35 = vpop.eup %764  ;;  %v403_v36 = vmul.f32 %v1234_v22, %v359_v27  ;;  %v404_v37 = vmul.f32 %v1236_v23, %v360_v32 }
 0x111   : > { %v767_v48 = vpop.eup %766  ;;  %v672_v42 = vpack.c.bf16 %v406_v34, %v405_v33  ;;  %v365_v49 = vmul.f32 %v765_v35, %v1195_v58  ;;  %v366_v43 = vmul.f32 %v765_v35, %v1198_v59 }
 0x112   : > { %v671_v50 = vpack.c.bf16 %v404_v37, %v403_v36  ;;  %v363_v51 = vmul.f32 %v767_v48, %v1201_v60  ;;  %v364_v44 = vmul.f32 %v767_v48, %v1204_v61 }
 0x113   : > { %522 = vst [vmem:[%s1251_s23 + $0x58] sm:$0xff] %v672_v42  ;;  %v409_v14 = vmul.f32 %v1234_v22, %v365_v49  ;;  %v410_v18 = vmul.f32 %v1236_v23, %v366_v43 }
 0x114   : > { %v769_v19 = vpop.eup %768  ;;  %521 = vst [vmem:[%s1251_s23 + $0x50] sm:$0xff] %v671_v50  ;;  %v407_v58 = vmul.f32 %v1234_v22, %v363_v51  ;;  %v408_v59 = vmul.f32 %v1236_v23, %v364_v44 }
 0x115   : > { %v771_v45 = vpop.eup %770  ;;  %v674_v20 = vpack.c.bf16 %v410_v18, %v409_v14  ;;  %v369_v60 = vmul.f32 %v769_v19, %v1215_v10  ;;  %v370_v61 = vmul.f32 %v769_v19, %v1218_v11 }
 0x116   : > { %v673_v46 = vpack.c.bf16 %v408_v59, %v407_v58  ;;  %v367_v47 = vmul.f32 %v771_v45, %v1221_v15  ;;  %v368_v0 = vmul.f32 %v771_v45, %v1224_v16 }
 0x117   : > { %524 = vst [vmem:[%s1251_s23 + $0x68] sm:$0xff] %v674_v20  ;;  %v413_v1 = vmul.f32 %v1234_v22, %v369_v60  ;;  %v414_v52 = vmul.f32 %v1236_v23, %v370_v61 }
 0x118   : > { %523 = vst [vmem:[%s1251_s23 + $0x60] sm:$0xff] %v673_v46  ;;  %v411_v10 = vmul.f32 %v1234_v22, %v367_v47  ;;  %v412_v11 = vmul.f32 %v1236_v23, %v368_v0 }
 0x119   : > { %v676_v53 = vpack.c.bf16 %v414_v52, %v413_v1 }
 0x11a   : > { %v675_v15 = vpack.c.bf16 %v412_v11, %v411_v10 }
 0x11b   : > { %526 = vst [vmem:[%s1251_s23 + $0x78] sm:$0xff] %v676_v53 }
 0x11c   : > { %525 = vst [vmem:[%s1251_s23 + $0x70] sm:$0xff] %v675_v15 }
 0x11d   : > { %843 = shalt.err (!%p840_p13)
}
 0x11e   : > { %s844_s17 = scalar_lea.hbm %s1324_s7, 2048  ;;  %s848_s3 = scalar_lea.hbm %s1374_s2, 4096 }
 0x11f   : > { %p845_p7 = scmp.ne.s32.totalorder %s1324_s7, %s844_s17  ;;  %p849_p1 = scmp.lt.u32.totalorder %s1324_s7, %s1374_s2 }
 0x120   : > { %p850_p11 = scmp.lt.u32.totalorder %s848_s3, %s844_s17  ;;  %p852_p9 = scmp.lt.u32.totalorder %s844_s17, %s1324_s7 }
 0x121   : > { %p846_p3 = pnand %p845_p7, %p1393_p10 }
 0x122   : > { %p851_p8 = por %p850_p11, %p849_p1 }
 0x123   : > { %p847_p12 = pneg %p846_p3 }
 0x124   : > { %p853_p2 = por %p852_p9, %p851_p8 }
 0x126   : > { %p854_p4 = pnand %p853_p2, %p847_p12 }
 0x128   : > { %857 = shalt.err (!%p854_p4)
}
 0x129   : > { %s907_s29 = smov 128   ;;  %s908_s20 = smov 8  }
 0x12a   : > { %685 = dma.vmem_to_hbm [thread:$0]  (%p1393_p10), %s1326_s30, 2048, %s1324_s7, %s528_s13, %s907_s29, %s907_s29, %s908_s20  }
 0x12b PF: > { %s557_s23 = sand.u32 1, %s888_s9   ;;  %p1394_p5 = scmp.ne.s32.totalorder %s1383_s22, 0 }
 0x12c   : > { %p1395_p0 = scmp.ge.s32.totalorder %s900_s12, 2  ;;  %s558_s28 = scalar_lea.sflag [#allocation4], %s557_s23 }
 0x12e   : > { %p696_p6 = pnand %p1395_p0, %p1394_p5 }
 0x130   : > { %883 = dma.done.wait (!%p696_p6), %s558_s28, 2048  }
 0x131   : > { %885 = vsyncadd (!%p696_p6), %s558_s28, 4294965248  ;;  %p16_p13 = scmp.ge.s32.totalorder %s949_s15, 4   ;;  %s1396_s9 = smov %s892_s10 }
 0x132   : > { %s1397_s10 = smov %s896_s11  ;;  %s1398_s11 = smov %s961_s18 }
 0x133   : > { %s1399_s12 = smov %s949_s15  ;;  %18 = sbr.rel (!%p16_p13) target bundleno = 6 (0x6), region = 77 }
 0x13a   :  { %563 = vsyncpa [#allocation3], 1 }
 0x13b   :  { %565 = vsyncpa [#allocation3 + $0x1], 1 }
 0x13c   :  { %566 = vsyncpa [#allocation6], 1 }
 0x13d   :  { %567 = vsyncpa [#allocation4], 1 }
 0x13e   :  { %569 = vsyncpa [#allocation4 + $0x1], 1 }

</bundles_post_ra>
